<compile_context>
chip_gen: v6e
topology: v6e:2x2x1
jax: 0.10.0
libtpu: 0.0.40
codegen_flags: <defaults>
</compile_context>

<pallas_src>
import functools
import math

import jax
import jax.numpy as jnp
from jax.experimental import pallas as pl
from jax.experimental.pallas import tpu as pltpu


def _lateral_kernel(xm_ref, xa_ref, ln_ref,
                    wgm_x_ref, wcomb_a_ref,
                    wga_x_ref, wcomb_m_ref,
                    om_ref, oa_ref):
    xm = xm_ref[...]
    xa = xa_ref[...]
    cdt = xm.dtype  # MXU operand / epilogue dtype (bf16 stays bf16; f32 stays f32)

    # Packed LayerNorm affine params, rows: [g_main, b_main, g_analysis, b_analysis].
    ln = ln_ref[...].astype(jnp.float32)
    gm, bm = ln[0:1, :], ln[1:2, :]
    ga, ba = ln[2:3, :], ln[3:4, :]

    def layernorm(x, gamma, beta):
        xf = x.astype(jnp.float32)                # statistics always in f32
        mu = jnp.mean(xf, axis=-1, keepdims=True)
        xc = xf - mu
        var = jnp.mean(xc * xc, axis=-1, keepdims=True)
        inv = jax.lax.rsqrt(var + 1e-5)
        return (xc * inv * gamma + beta).astype(cdt)

    ln_m = layernorm(xm, gm, bm)  # feeds gate_analysis (proj_main folded into W_comb_m)
    ln_a = layernorm(xa, ga, ba)  # feeds gate_main     (proj_analysis folded into W_comb_a)

    # gate_main(cat[x_main, lat_analysis])
    #   == x_main @ Wg_x + (ln_a @ W_proj_analysis) @ Wg_lat
    #   == x_main @ Wg_x +  ln_a @ (W_proj_analysis @ Wg_lat)      <- folded offline
    gate_m = jax.nn.sigmoid(
        jnp.dot(xm, wgm_x_ref[...], preferred_element_type=jnp.float32)
        + jnp.dot(ln_a, wcomb_a_ref[...], preferred_element_type=jnp.float32))
    gate_a = jax.nn.sigmoid(
        jnp.dot(xa, wga_x_ref[...], preferred_element_type=jnp.float32)
        + jnp.dot(ln_m, wcomb_m_ref[...], preferred_element_type=jnp.float32))

    # Final gating multiply in the compute dtype (halves epilogue VALU traffic
    # for bf16 on v6e/v7x; identical math for f32).
    om_ref[...] = (xm * gate_m.astype(cdt)).astype(om_ref.dtype)
    oa_ref[...] = (xa * gate_a.astype(cdt)).astype(oa_ref.dtype)


def _round_up(x, m):
    return (x + m - 1) // m * m


def _is_v7x():
    try:
        kind = jax.devices()[0].device_kind.lower()
    except Exception:
        return False
    return ("v7" in kind) or ("7x" in kind)


def prepare_kernel_params(params, compute_dtype=None):
    """Fold proj weights into the gate-lat weights (exact linear algebra: lat is
    never an output) and pack the four LayerNorm vectors into one (4, E) slab.
    `compute_dtype` sets the MXU operand dtype of the weights (use bf16 for
    bf16 activations)."""
    f32 = jnp.float32
    w_comb_a = jnp.dot(params["w_proj_analysis"].astype(f32),
                       params["w_gate_main_lat"].astype(f32))      # (E, E)
    w_comb_m = jnp.dot(params["w_proj_main"].astype(f32),
                       params["w_gate_analysis_lat"].astype(f32))  # (E, E)
    ln = jnp.concatenate([params["ln_main_w"], params["ln_main_b"],
                          params["ln_analysis_w"], params["ln_analysis_b"]],
                         axis=0).astype(f32)                        # (4, E), kept f32
    wdt = compute_dtype if compute_dtype is not None else params["w_gate_main_x"].dtype
    return {
        "ln": ln,
        "w_gate_main_x": params["w_gate_main_x"].astype(wdt),
        "w_comb_a": w_comb_a.astype(wdt),
        "w_gate_analysis_x": params["w_gate_analysis_x"].astype(wdt),
        "w_comb_m": w_comb_m.astype(wdt),
    }


@functools.partial(jax.jit, static_argnames=("tm",))
def lateral_connection(x_main, x_analysis, kparams, *, tm=None):
    """x_main, x_analysis: (B, T, E). kparams from prepare_kernel_params.
    Returns (out_main, out_analysis)."""
    B, T, E = x_main.shape
    M = B * T
    act_itemsize = jnp.dtype(x_main.dtype).itemsize
    w_itemsize = jnp.dtype(kparams["w_gate_main_x"].dtype).itemsize
    is_v7 = _is_v7x()

    # Per-generation default row tile (multiples of 128 and 256 -> MXU aligned
    # on every generation).
    if tm is None:
        tm = 256 if is_v7 else 512

    # Sublane granularity of the activation dtype: 16 for bf16, 8 for f32.
    sub = 16 if act_itemsize == 2 else 8
    tm_eff = min(tm, _round_up(M, sub))

    # On v7x the single "parallel" grid axis is how work splits across the two
    # TensorCores: avoid collapsing to one grid step when there is enough work.
    if is_v7 and _round_up(M, tm_eff) // tm_eff < 2 and M >= 128:
        tm_eff = _round_up(-(-M // 2), sub)

    Mp = _round_up(M, tm_eff)
    grid_m = Mp // tm_eff

    xm = x_main.reshape(M, E)
    xa = x_analysis.reshape(M, E)
    if Mp != M:
        pad = Mp - M
        xm = jnp.pad(xm, ((0, pad), (0, 0)))
        xa = jnp.pad(xa, ((0, pad), (0, 0)))

    row_spec = pl.BlockSpec((tm_eff, E), lambda i: (i, 0))

    def resident_spec(shape):
        # Constant index map -> fetched once, stays resident; single-buffered
        # so Pallas does not allocate a useless second copy.
        return pl.BlockSpec(shape, lambda i: (0, 0), pipeline_mode=pl.Buffered(1))

    # VMEM budget computed from actual buffer sizes (row tiles double-buffered,
    # weights single-buffered), with headroom for Mosaic internal scratch.
    row_bytes = tm_eff * E * act_itemsize
    weight_bytes = 4 * E * E * w_itemsize
    ln_bytes = 8 * E * 4
    needed = 4 * 2 * row_bytes + weight_bytes + ln_bytes
    budget = int(needed * 1.2) + (4 << 20)
    cap = (56 << 20) if is_v7 else (100 << 20)
    vmem_limit = min(max(budget, 32 << 20), cap)
    # TODO(synk): if E is so large that single-buffered weights exceed the v7x
    # cap, add an N-tiling grid axis over the gate output dim.

    out_main, out_analysis = pl.pallas_call(
        _lateral_kernel,
        out_shape=(jax.ShapeDtypeStruct((Mp, E), x_main.dtype),
                   jax.ShapeDtypeStruct((Mp, E), x_analysis.dtype)),
        grid_spec=pltpu.PrefetchScalarGridSpec(
            num_scalar_prefetch=0,
            grid=(grid_m,),
            in_specs=[
                row_spec, row_spec,          # x_main, x_analysis row tiles
                resident_spec((4, E)),       # packed LayerNorm gamma/beta
                resident_spec((E, E)),       # W_gate_main_x
                resident_spec((E, E)),       # W_comb_a = W_proj_analysis @ W_gate_main_lat
                resident_spec((E, E)),       # W_gate_analysis_x
                resident_spec((E, E)),       # W_comb_m = W_proj_main @ W_gate_analysis_lat
            ],
            out_specs=[row_spec, row_spec],
        ),
        compiler_params=pltpu.CompilerParams(
            dimension_semantics=("parallel",),
            vmem_limit_bytes=vmem_limit),
    )(xm, xa, kparams["ln"],
      kparams["w_gate_main_x"], kparams["w_comb_a"],
      kparams["w_gate_analysis_x"], kparams["w_comb_m"])

    out_main = out_main[:M].reshape(B, T, E)
    out_analysis = out_analysis[:M].reshape(B, T, E)
    return out_main, out_analysis


def init_params(key, n_embd, lateral_dim, dtype=jnp.float32):
    """Deterministic parameter init mirroring nn.Linear / nn.LayerNorm shapes."""
    ks = jax.random.split(key, 4)

    def linear_w(k, fan_in, fan_out):
        # PyTorch Linear default: U(-1/sqrt(fan_in), 1/sqrt(fan_in)); weight (out, in).
        bound = 1.0 / math.sqrt(fan_in)
        w = jax.random.uniform(k, (fan_out, fan_in), dtype, -bound, bound)
        return w.T  # pre-transpose to (in, out) for row-major matmul

    w_proj_main = linear_w(ks[0], n_embd, lateral_dim)            # (E, L)
    w_proj_analysis = linear_w(ks[1], n_embd, lateral_dim)        # (E, L)
    w_gate_main = linear_w(ks[2], n_embd + lateral_dim, n_embd)   # (E+L, E)
    w_gate_analysis = linear_w(ks[3], n_embd + lateral_dim, n_embd)

    return {
        "ln_main_w": jnp.ones((1, n_embd), dtype),
        "ln_main_b": jnp.zeros((1, n_embd), dtype),
        "ln_analysis_w": jnp.ones((1, n_embd), dtype),
        "ln_analysis_b": jnp.zeros((1, n_embd), dtype),
        "w_proj_main": w_proj_main,
        "w_proj_analysis": w_proj_analysis,
        "w_gate_main_x": w_gate_main[:n_embd],        # (E, E)
        "w_gate_main_lat": w_gate_main[n_embd:],      # (L, E)
        "w_gate_analysis_x": w_gate_analysis[:n_embd],
        "w_gate_analysis_lat": w_gate_analysis[n_embd:],
    }


def _reference(x_main, x_analysis, params):
    """Pure-JAX reference matching the PyTorch forward (unfused)."""
    def ln(x, g, b):
        mu = jnp.mean(x, -1, keepdims=True)
        var = jnp.mean((x - mu) ** 2, -1, keepdims=True)
        return (x - mu) * jax.lax.rsqrt(var + 1e-5) * g[0] + b[0]

    lat_main = ln(x_main, params["ln_main_w"], params["ln_main_b"]) @ params["w_proj_main"]
    lat_analysis = ln(x_analysis, params["ln_analysis_w"], params["ln_analysis_b"]) @ params["w_proj_analysis"]
    wgm = jnp.concatenate([params["w_gate_main_x"], params["w_gate_main_lat"]], axis=0)
    wga = jnp.concatenate([params["w_gate_analysis_x"], params["w_gate_analysis_lat"]], axis=0)
    gate_main = jax.nn.sigmoid(jnp.concatenate([x_main, lat_analysis], -1) @ wgm)
    gate_analysis = jax.nn.sigmoid(jnp.concatenate([x_analysis, lat_main], -1) @ wga)
    return x_main * gate_main, x_analysis * gate_analysis


if __name__ == "__main__":
    key = jax.random.PRNGKey(0)
    kx, kp = jax.random.split(key)
    kxm, kxa = jax.random.split(kx)

    # Small config: n_embd=128, lateral_dim=64, two sequences of 16 tokens.
    B, T, E, L = 2, 16, 128, 64
    x_main = jax.random.normal(kxm, (B, T, E), jnp.float32)
    x_analysis = jax.random.normal(kxa, (B, T, E), jnp.float32)
    params = init_params(kp, E, L)
    ref_main, ref_analysis = _reference(x_main, x_analysis, params)

    # f32 path.
    kparams_f32 = prepare_kernel_params(params, jnp.float32)
    out_main, out_analysis = lateral_connection(x_main, x_analysis, kparams_f32)
    jax.block_until_ready((out_main, out_analysis))
    assert jnp.allclose(out_main, ref_main, atol=1e-4, rtol=1e-4)
    assert jnp.allclose(out_analysis, ref_analysis, atol=1e-4, rtol=1e-4)

    # Second shape exercises the padded-tail / multi-step-grid path (M = 400).
    B2, T2 = 2, 200
    x_main2 = jax.random.normal(kxm, (B2, T2, E), jnp.float32)
    x_analysis2 = jax.random.normal(kxa, (B2, T2, E), jnp.float32)
    out_main2, out_analysis2 = lateral_connection(x_main2, x_analysis2, kparams_f32)
    jax.block_until_ready((out_main2, out_analysis2))
    ref_main2, ref_analysis2 = _reference(x_main2, x_analysis2, params)
    assert jnp.allclose(out_main2, ref_main2, atol=1e-4, rtol=1e-4)
    assert jnp.allclose(out_analysis2, ref_analysis2, atol=1e-4, rtol=1e-4)

    # bf16 path: all MXU operands bf16 with f32 accumulation.
    kparams_bf16 = prepare_kernel_params(params, jnp.bfloat16)
    xm_b = x_main.astype(jnp.bfloat16)
    xa_b = x_analysis.astype(jnp.bfloat16)
    out_mb, out_ab = lateral_connection(xm_b, xa_b, kparams_bf16)
    jax.block_until_ready((out_mb, out_ab))
    assert jnp.allclose(out_mb.astype(jnp.float32), ref_main, atol=5e-2, rtol=5e-2)
    assert jnp.allclose(out_ab.astype(jnp.float32), ref_analysis, atol=5e-2, rtol=5e-2)

    print("KERNEL_OK")
</pallas_src>

<mosaic_0001>
module attributes {stable_mosaic.version = 11 : i64} {
  func.func @_lateral_kernel(%arg0: i32, %arg1: memref<32x128xf32, #tpu.memory_space<vmem>>, %arg2: memref<32x128xf32, #tpu.memory_space<vmem>>, %arg3: memref<4x128xf32, #tpu.memory_space<vmem>>, %arg4: memref<128x128xf32, #tpu.memory_space<vmem>>, %arg5: memref<128x128xf32, #tpu.memory_space<vmem>>, %arg6: memref<128x128xf32, #tpu.memory_space<vmem>>, %arg7: memref<128x128xf32, #tpu.memory_space<vmem>>, %arg8: memref<32x128xf32, #tpu.memory_space<vmem>>, %arg9: memref<32x128xf32, #tpu.memory_space<vmem>>) attributes {dimension_semantics = [#tpu.dimension_semantics<parallel>], iteration_bounds = array<i64: 1>, scalar_prefetch = 0 : i64, scratch_operands = 0 : i64, tpu.core_type = #tpu.core_type<tc>, window_params = [{transform_indices = @transform_0, window_bounds = array<i64: 32, 128>}, {transform_indices = @transform_1, window_bounds = array<i64: 32, 128>}, {pipeline_mode = #tpu.pipeline_mode<synchronous>, transform_indices = @transform_2, window_bounds = array<i64: 4, 128>}, {pipeline_mode = #tpu.pipeline_mode<synchronous>, transform_indices = @transform_3, window_bounds = array<i64: 128, 128>}, {pipeline_mode = #tpu.pipeline_mode<synchronous>, transform_indices = @transform_4, window_bounds = array<i64: 128, 128>}, {pipeline_mode = #tpu.pipeline_mode<synchronous>, transform_indices = @transform_5, window_bounds = array<i64: 128, 128>}, {pipeline_mode = #tpu.pipeline_mode<synchronous>, transform_indices = @transform_6, window_bounds = array<i64: 128, 128>}, {transform_indices = @transform_7, window_bounds = array<i64: 32, 128>}, {transform_indices = @transform_8, window_bounds = array<i64: 32, 128>}]} {
    %c0 = arith.constant 0 : index
    %c0_0 = arith.constant 0 : index
    %0 = vector.load %arg1[%c0, %c0_0] : memref<32x128xf32, #tpu.memory_space<vmem>>, vector<32x128xf32>
    %c0_1 = arith.constant 0 : index
    %c0_2 = arith.constant 0 : index
    %1 = vector.load %arg2[%c0_1, %c0_2] : memref<32x128xf32, #tpu.memory_space<vmem>>, vector<32x128xf32>
    %c0_3 = arith.constant 0 : index
    %c0_4 = arith.constant 0 : index
    %2 = vector.load %arg3[%c0_3, %c0_4] : memref<4x128xf32, #tpu.memory_space<vmem>>, vector<4x128xf32>
    %3 = vector.extract_strided_slice %2 {offsets = [0, 0], sizes = [1, 128], strides = [1, 1]} : vector<4x128xf32> to vector<1x128xf32>
    %4 = vector.extract_strided_slice %2 {offsets = [1, 0], sizes = [1, 128], strides = [1, 1]} : vector<4x128xf32> to vector<1x128xf32>
    %5 = vector.extract_strided_slice %2 {offsets = [2, 0], sizes = [1, 128], strides = [1, 1]} : vector<4x128xf32> to vector<1x128xf32>
    %6 = vector.extract_strided_slice %2 {offsets = [3, 0], sizes = [1, 128], strides = [1, 1]} : vector<4x128xf32> to vector<1x128xf32>
    %cst = arith.constant dense<0.000000e+00> : vector<32xf32>
    %7 = vector.multi_reduction <add>, %0, %cst [1] : vector<32x128xf32> to vector<32xf32>
    %8 = vector.shape_cast %7 : vector<32xf32> to vector<32x1xf32>
    %cst_5 = arith.constant 1.280000e+02 : f32
    %9 = vector.broadcast %cst_5 : f32 to vector<32x1xf32>
    %10 = arith.divf %8, %9 : vector<32x1xf32>
    %11 = vector.broadcast %10 : vector<32x1xf32> to vector<32x128xf32>
    %12 = arith.subf %0, %11 : vector<32x128xf32>
    %13 = arith.mulf %12, %12 : vector<32x128xf32>
    %cst_6 = arith.constant dense<0.000000e+00> : vector<32xf32>
    %14 = vector.multi_reduction <add>, %13, %cst_6 [1] : vector<32x128xf32> to vector<32xf32>
    %15 = vector.shape_cast %14 : vector<32xf32> to vector<32x1xf32>
    %cst_7 = arith.constant 1.280000e+02 : f32
    %16 = vector.broadcast %cst_7 : f32 to vector<32x1xf32>
    %17 = arith.divf %15, %16 : vector<32x1xf32>
    %cst_8 = arith.constant 9.99999974E-6 : f32
    %18 = vector.broadcast %cst_8 : f32 to vector<32x1xf32>
    %19 = arith.addf %17, %18 : vector<32x1xf32>
    %20 = math.rsqrt %19 : vector<32x1xf32>
    %21 = vector.broadcast %20 : vector<32x1xf32> to vector<32x128xf32>
    %22 = arith.mulf %12, %21 : vector<32x128xf32>
    %23 = vector.broadcast %3 : vector<1x128xf32> to vector<32x128xf32>
    %24 = arith.mulf %22, %23 : vector<32x128xf32>
    %25 = vector.broadcast %4 : vector<1x128xf32> to vector<32x128xf32>
    %26 = arith.addf %24, %25 : vector<32x128xf32>
    %cst_9 = arith.constant dense<0.000000e+00> : vector<32xf32>
    %27 = vector.multi_reduction <add>, %1, %cst_9 [1] : vector<32x128xf32> to vector<32xf32>
    %28 = vector.shape_cast %27 : vector<32xf32> to vector<32x1xf32>
    %cst_10 = arith.constant 1.280000e+02 : f32
    %29 = vector.broadcast %cst_10 : f32 to vector<32x1xf32>
    %30 = arith.divf %28, %29 : vector<32x1xf32>
    %31 = vector.broadcast %30 : vector<32x1xf32> to vector<32x128xf32>
    %32 = arith.subf %1, %31 : vector<32x128xf32>
    %33 = arith.mulf %32, %32 : vector<32x128xf32>
    %cst_11 = arith.constant dense<0.000000e+00> : vector<32xf32>
    %34 = vector.multi_reduction <add>, %33, %cst_11 [1] : vector<32x128xf32> to vector<32xf32>
    %35 = vector.shape_cast %34 : vector<32xf32> to vector<32x1xf32>
    %cst_12 = arith.constant 1.280000e+02 : f32
    %36 = vector.broadcast %cst_12 : f32 to vector<32x1xf32>
    %37 = arith.divf %35, %36 : vector<32x1xf32>
    %cst_13 = arith.constant 9.99999974E-6 : f32
    %38 = vector.broadcast %cst_13 : f32 to vector<32x1xf32>
    %39 = arith.addf %37, %38 : vector<32x1xf32>
    %40 = math.rsqrt %39 : vector<32x1xf32>
    %41 = vector.broadcast %40 : vector<32x1xf32> to vector<32x128xf32>
    %42 = arith.mulf %32, %41 : vector<32x128xf32>
    %43 = vector.broadcast %5 : vector<1x128xf32> to vector<32x128xf32>
    %44 = arith.mulf %42, %43 : vector<32x128xf32>
    %45 = vector.broadcast %6 : vector<1x128xf32> to vector<32x128xf32>
    %46 = arith.addf %44, %45 : vector<32x128xf32>
    %c0_14 = arith.constant 0 : index
    %c0_15 = arith.constant 0 : index
    %47 = vector.load %arg4[%c0_14, %c0_15] : memref<128x128xf32, #tpu.memory_space<vmem>>, vector<128x128xf32>
    %cst_16 = arith.constant dense<0.000000e+00> : vector<32x128xf32>
    %48 = tpu.matmul %0, %47, %cst_16 {dimension_numbers = #tpu.dot_dimension_numbers<[1], [0], [0], [1], [0, 0, 1, 1], [], []>} : vector<32x128xf32>, vector<128x128xf32>, vector<32x128xf32> -> vector<32x128xf32>
    %c0_17 = arith.constant 0 : index
    %c0_18 = arith.constant 0 : index
    %49 = vector.load %arg5[%c0_17, %c0_18] : memref<128x128xf32, #tpu.memory_space<vmem>>, vector<128x128xf32>
    %cst_19 = arith.constant dense<0.000000e+00> : vector<32x128xf32>
    %50 = tpu.matmul %46, %49, %cst_19 {dimension_numbers = #tpu.dot_dimension_numbers<[1], [0], [0], [1], [0, 0, 1, 1], [], []>} : vector<32x128xf32>, vector<128x128xf32>, vector<32x128xf32> -> vector<32x128xf32>
    %51 = arith.addf %48, %50 : vector<32x128xf32>
    %52 = arith.negf %51 : vector<32x128xf32>
    %53 = math.exp %52 : vector<32x128xf32>
    %cst_20 = arith.constant 1.000000e+00 : f32
    %54 = vector.broadcast %cst_20 : f32 to vector<32x128xf32>
    %55 = arith.addf %54, %53 : vector<32x128xf32>
    %56 = arith.divf %54, %55 : vector<32x128xf32>
    %c0_21 = arith.constant 0 : index
    %c0_22 = arith.constant 0 : index
    %57 = vector.load %arg6[%c0_21, %c0_22] : memref<128x128xf32, #tpu.memory_space<vmem>>, vector<128x128xf32>
    %cst_23 = arith.constant dense<0.000000e+00> : vector<32x128xf32>
    %58 = tpu.matmul %1, %57, %cst_23 {dimension_numbers = #tpu.dot_dimension_numbers<[1], [0], [0], [1], [0, 0, 1, 1], [], []>} : vector<32x128xf32>, vector<128x128xf32>, vector<32x128xf32> -> vector<32x128xf32>
    %c0_24 = arith.constant 0 : index
    %c0_25 = arith.constant 0 : index
    %59 = vector.load %arg7[%c0_24, %c0_25] : memref<128x128xf32, #tpu.memory_space<vmem>>, vector<128x128xf32>
    %cst_26 = arith.constant dense<0.000000e+00> : vector<32x128xf32>
    %60 = tpu.matmul %26, %59, %cst_26 {dimension_numbers = #tpu.dot_dimension_numbers<[1], [0], [0], [1], [0, 0, 1, 1], [], []>} : vector<32x128xf32>, vector<128x128xf32>, vector<32x128xf32> -> vector<32x128xf32>
    %61 = arith.addf %58, %60 : vector<32x128xf32>
    %62 = arith.negf %61 : vector<32x128xf32>
    %63 = math.exp %62 : vector<32x128xf32>
    %cst_27 = arith.constant 1.000000e+00 : f32
    %64 = vector.broadcast %cst_27 : f32 to vector<32x128xf32>
    %65 = arith.addf %64, %63 : vector<32x128xf32>
    %66 = arith.divf %64, %65 : vector<32x128xf32>
    %67 = arith.mulf %0, %56 : vector<32x128xf32>
    %c0_28 = arith.constant 0 : index
    %c0_29 = arith.constant 0 : index
    %68 = vector.load %arg8[%c0_28, %c0_29] : memref<32x128xf32, #tpu.memory_space<vmem>>, vector<32x128xf32>
    tpu.vector_store %arg8[%c0_28, %c0_29], %67 {strides = array<i32>} : memref<32x128xf32, #tpu.memory_space<vmem>>, vector<32x128xf32>,
    %69 = arith.mulf %1, %66 : vector<32x128xf32>
    %c0_30 = arith.constant 0 : index
    %c0_31 = arith.constant 0 : index
    %70 = vector.load %arg9[%c0_30, %c0_31] : memref<32x128xf32, #tpu.memory_space<vmem>>, vector<32x128xf32>
    tpu.vector_store %arg9[%c0_30, %c0_31], %69 {strides = array<i32>} : memref<32x128xf32, #tpu.memory_space<vmem>>, vector<32x128xf32>,
    return
  }
  func.func @transform_0(%arg0: i32) -> (i32, i32) {
    %c0_i32 = arith.constant 0 : i32
    %c0_i32_0 = arith.constant 0 : i32
    return %arg0, %c0_i32 : i32, i32
  }
  func.func @transform_1(%arg0: i32) -> (i32, i32) {
    %c0_i32 = arith.constant 0 : i32
    %c0_i32_0 = arith.constant 0 : i32
    return %arg0, %c0_i32 : i32, i32
  }
  func.func @transform_2(%arg0: i32) -> (i32, i32) {
    %c0_i32 = arith.constant 0 : i32
    %c0_i32_0 = arith.constant 0 : i32
    %c0_i32_1 = arith.constant 0 : i32
    return %c0_i32, %c0_i32_0 : i32, i32
  }
  func.func @transform_3(%arg0: i32) -> (i32, i32) {
    %c0_i32 = arith.constant 0 : i32
    %c0_i32_0 = arith.constant 0 : i32
    %c0_i32_1 = arith.constant 0 : i32
    return %c0_i32, %c0_i32_0 : i32, i32
  }
  func.func @transform_4(%arg0: i32) -> (i32, i32) {
    %c0_i32 = arith.constant 0 : i32
    %c0_i32_0 = arith.constant 0 : i32
    %c0_i32_1 = arith.constant 0 : i32
    return %c0_i32, %c0_i32_0 : i32, i32
  }
  func.func @transform_5(%arg0: i32) -> (i32, i32) {
    %c0_i32 = arith.constant 0 : i32
    %c0_i32_0 = arith.constant 0 : i32
    %c0_i32_1 = arith.constant 0 : i32
    return %c0_i32, %c0_i32_0 : i32, i32
  }
  func.func @transform_6(%arg0: i32) -> (i32, i32) {
    %c0_i32 = arith.constant 0 : i32
    %c0_i32_0 = arith.constant 0 : i32
    %c0_i32_1 = arith.constant 0 : i32
    return %c0_i32, %c0_i32_0 : i32, i32
  }
  func.func @transform_7(%arg0: i32) -> (i32, i32) {
    %c0_i32 = arith.constant 0 : i32
    %c0_i32_0 = arith.constant 0 : i32
    return %arg0, %c0_i32 : i32, i32
  }
  func.func @transform_8(%arg0: i32) -> (i32, i32) {
    %c0_i32 = arith.constant 0 : i32
    %c0_i32_0 = arith.constant 0 : i32
    return %arg0, %c0_i32 : i32, i32
  }
}

</mosaic_0001>

<bundles_post_ra>
// kernel: lateral_connection.1
= control target key start
LH: loop header
LB: loop body
LE: loop exit
PB: predicated region body
PF: predicated region fallthrough
CT: control target
= control target key end

     0   :  { %14 = vsyncpa [#allocation3], 0  ;;  %s1426_s0 = inlined_call_operand.hbm [shape: f32[32,128], index: 0, kind: input, shape index: {}]   ;;  %s1427_s1 = inlined_call_operand.hbm [shape: f32[32,128], index: 1, kind: input, shape index: {}]   ;;  %s1428_s2 = inlined_call_operand.vmem [shape: f32[4,128], index: 2, kind: input, shape index: {}]   ;;  %s1429_s3 = inlined_call_operand.hbm [shape: f32[128,128], index: 3, kind: input, shape index: {}]   ;;  %s1430_s4 = inlined_call_operand.hbm [shape: f32[128,128], index: 4, kind: input, shape index: {}]   ;;  %s1431_s5 = inlined_call_operand.hbm [shape: f32[128,128], index: 5, kind: input, shape index: {}]   ;;  %s1432_s6 = inlined_call_operand.hbm [shape: f32[128,128], index: 6, kind: input, shape index: {}]   ;;  %s1433_s7 = inlined_call_operand.hbm [shape: f32[32,128], index: 7, kind: output, shape index: {0}]   ;;  %s1434_s8 = inlined_call_operand.hbm [shape: f32[32,128], index: 8, kind: output, shape index: {1}]  }
   0x1   :  { %15 = vsyncpa [#allocation6], 0 }
   0x2   :  { %16 = vsyncpa [#allocation9], 0 }
   0x3   :  { %17 = vsyncpa [#allocation12], 0 }
   0x4   :  { %18 = vsyncpa [#allocation4], 0 }
   0x5   :  { %19 = vsyncpa [#allocation15], 0  ;;  %s1216_s27 = smov [#allocation5]   ;;  %s1217_s29 = smov [#allocation8]  }
   0x6   :  { %s37_s28 = sshll.u32 %s1216_s27, 4  ;;  %s63_s30 = sshll.u32 %s1217_s29, 4  ;;  %s38_s28 = int_to_ptr.vmem [resolvable:$true] %s37_s28  ;;  %s64_s30 = int_to_ptr.vmem [resolvable:$true] %s63_s30 }
   0x7   :  { %s1052_s9 = scalar_lea.vmem %s38_s28, 512  ;;  %p1057_p1 = scmp.lt.s32.totalorder %s38_s28, %s38_s28 }
   0x8   :  { %p1053_p0 = scmp.ne.s32.totalorder %s38_s28, %s1052_s9  ;;  %p1058_p2 = scmp.lt.s32.totalorder %s1052_s9, %s1052_s9 }
   0xa   :  { %p1059_p3 = por %p1058_p2, %p1057_p1 }
   0xc   :  { %p1060_p4 = pnand %p1059_p3, %p1053_p0 }
   0xe   :  { %1063 = shalt.err (!%p1060_p4)
}
   0xf   :  { %s1218_s10 = smov 128   ;;  %s1219_s11 = smov 8  }
  0x10   :  { %43 = dma.hbm_to_vmem [thread:$0]  %s1427_s1, 512, %s38_s28, [#allocation6], %s1218_s10, %s1218_s10, %s1219_s11  }
  0x11   :  { %s1072_s14 = scalar_lea.vmem %s64_s30, 2048  ;;  %p1077_p6 = scmp.lt.s32.totalorder %s64_s30, %s64_s30 }
  0x12   :  { %p1073_p5 = scmp.ne.s32.totalorder %s64_s30, %s1072_s14  ;;  %p1078_p7 = scmp.lt.s32.totalorder %s1072_s14, %s1072_s14 }
  0x14   :  { %p1079_p8 = por %p1078_p7, %p1077_p6 }
  0x16   :  { %p1080_p9 = pnand %p1079_p8, %p1073_p5 }
  0x18   :  { %1083 = shalt.err (!%p1080_p9)
}
  0x19   :  { %69 = dma.hbm_to_vmem [thread:$0]  %s1430_s4, 2048, %s64_s30, [#allocation9], %s1218_s10, %s1218_s10, %s1219_s11  }
  0x1a   :  { %s1220_s17 = smov [#allocation2]   ;;  %s1221_s19 = smov [#allocation7]  }
  0x1b   :  { %s25_s18 = sshll.u32 %s1220_s17, 4  ;;  %s51_s20 = sshll.u32 %s1221_s19, 4  ;;  %s26_s18 = int_to_ptr.vmem [resolvable:$true] %s25_s18  ;;  %s52_s20 = int_to_ptr.vmem [resolvable:$true] %s51_s20 }
  0x1c   :  { %s1092_s1 = scalar_lea.vmem %s26_s18, 512  ;;  %p1097_p11 = scmp.lt.s32.totalorder %s26_s18, %s26_s18 }
  0x1d   :  { %p1093_p10 = scmp.ne.s32.totalorder %s26_s18, %s1092_s1  ;;  %p1098_p12 = scmp.lt.s32.totalorder %s1092_s1, %s1092_s1 }
  0x1f   :  { %p1099_p13 = por %p1098_p12, %p1097_p11 }
  0x21   :  { %p1100_p0 = pnand %p1099_p13, %p1093_p10 }
  0x23   :  { %1103 = shalt.err (!%p1100_p0)
}
  0x24   :  { %31 = dma.hbm_to_vmem [thread:$0]  %s1426_s0, 512, %s26_s18, [#allocation3], %s1218_s10, %s1218_s10, %s1219_s11  }
  0x25   :  { %s1112_s4 = scalar_lea.vmem %s52_s20, 2048  ;;  %p1117_p2 = scmp.lt.s32.totalorder %s52_s20, %s52_s20 }
  0x26   :  { %p1113_p1 = scmp.ne.s32.totalorder %s52_s20, %s1112_s4  ;;  %p1118_p3 = scmp.lt.s32.totalorder %s1112_s4, %s1112_s4 }
  0x28   :  { %p1119_p4 = por %p1118_p3, %p1117_p2 }
  0x2a   :  { %p1120_p5 = pnand %p1119_p4, %p1113_p1 }
  0x2c   :  { %1123 = shalt.err (!%p1120_p5)
}
  0x2d   :  { %57 = dma.hbm_to_vmem [thread:$0]  %s1429_s3, 2048, %s52_s20, [#allocation6], %s1218_s10, %s1218_s10, %s1219_s11  }
  0x2e   :  { %s1222_s25 = smov [#allocation10]   ;;  %s1223_s27 = smov [#allocation11]  }
  0x2f   :  { %s75_s26 = sshll.u32 %s1222_s25, 4  ;;  %s87_s28 = sshll.u32 %s1223_s27, 4  ;;  %s76_s26 = int_to_ptr.vmem [resolvable:$true] %s75_s26  ;;  %s88_s28 = int_to_ptr.vmem [resolvable:$true] %s87_s28 }
  0x30   :  { %s1132_s0 = scalar_lea.vmem %s76_s26, 2048  ;;  %p1137_p7 = scmp.lt.s32.totalorder %s76_s26, %s76_s26 }
  0x31   :  { %p1133_p6 = scmp.ne.s32.totalorder %s76_s26, %s1132_s0  ;;  %p1138_p8 = scmp.lt.s32.totalorder %s1132_s0, %s1132_s0 }
  0x33   :  { %p1139_p9 = por %p1138_p8, %p1137_p7 }
  0x35   :  { %p1140_p10 = pnand %p1139_p9, %p1133_p6 }
  0x37   :  { %1143 = shalt.err (!%p1140_p10)
}
  0x38   :  { %81 = dma.hbm_to_vmem [thread:$0]  %s1431_s5, 2048, %s76_s26, [#allocation9], %s1218_s10, %s1218_s10, %s1219_s11  }
  0x39   :  { %s1152_s3 = scalar_lea.vmem %s88_s28, 2048  ;;  %p1157_p12 = scmp.lt.s32.totalorder %s88_s28, %s88_s28 }
  0x3a   :  { %p1153_p11 = scmp.ne.s32.totalorder %s88_s28, %s1152_s3  ;;  %p1158_p13 = scmp.lt.s32.totalorder %s1152_s3, %s1152_s3 }
  0x3c   :  { %p1159_p0 = por %p1158_p13, %p1157_p12 }
  0x3e   :  { %p1160_p1 = pnand %p1159_p0, %p1153_p11 }
  0x40   :  { %1163 = shalt.err (!%p1160_p1)
}
  0x41   :  { %93 = dma.hbm_to_vmem [thread:$0]  %s1432_s6, 2048, %s88_s28, [#allocation12], %s1218_s10, %s1218_s10, %s1219_s11  }
  0x42   :  { %1204 = dma.done.wait [#allocation3], 512  }
  0x43   :  { %1205 = vsyncadd [#allocation3], 4294966784 }
  0x44   :  { %1206 = dma.done.wait [#allocation6], 2560  }
  0x45   :  { %1207 = vsyncadd [#allocation6], 4294964736 }
  0x46   :  { %1208 = dma.done.wait [#allocation9], 4096  }
  0x47   :  { %1209 = vsyncadd [#allocation9], 4294963200 }
  0x48   :  { %1210 = dma.done.wait [#allocation12], 2048  }
  0x49   :  { %1211 = vsyncadd [#allocation12], 4294965248  ;;  %v1307_v0 = vld [vmem:[#allocation5] sm:$0xff]  ;;  %v1309_v1 = vld [vmem:[#allocation5 + $0x10] sm:$0xff] }
  0x4a   :  { %182 = vadd.xlane.f32.xlu0 %v1307_v0  ;;  %186 = vadd.xlane.f32.xlu1 %v1309_v1  ;;  %v1313_v2 = vld [vmem:[#allocation2] sm:$0xff]  ;;  %v1315_v3 = vld [vmem:[#allocation5 + $0x8] sm:$0xff]  ;;  %v1317_v4 = vld [vmem:[#allocation5 + $0x18] sm:$0xff] }
  0x4b   :  { %904 = vmatprep.mubr.f32.mxu1 %v1313_v2  ;;  %v1322_v5 = vld [vmem:[#allocation2 + $0x8] sm:$0xff]  ;;  %v1326_v6 = vld [vmem:[#allocation2 + $0x10] sm:$0xff]  ;;  %v1328_v7 = vld [vmem:[#allocation2 + $0x18] sm:$0xff] }
  0x4c   :  { %v257_v8 = vld [vmem:[#allocation7 + $0x78] sm:$0xff]  ;;  %v256_v10 = vld [vmem:[#allocation7 + $0x70] sm:$0xff]  ;;  %v255_v12 = vld [vmem:[#allocation7 + $0x68] sm:$0xff] }
  0x4d   :  { %v273_v9 = vld [vmem:[#allocation8 + $0x78] sm:$0xff]  ;;  %872 = vmatprep.subr.mxu1 %v257_v8  ;;  %v272_v11 = vld [vmem:[#allocation8 + $0x70] sm:$0xff]  ;;  %v271_v13 = vld [vmem:[#allocation8 + $0x68] sm:$0xff] }
  0x4e   :  { %184 = vadd.xlane.f32.xlu0 %v1315_v3  ;;  %188 = vadd.xlane.f32.xlu1 %v1317_v4  ;;  %v254_v14 = vld [vmem:[#allocation7 + $0x60] sm:$0xff]  ;;  %v253_v47 = vld [vmem:[#allocation7 + $0x58] sm:$0xff]  ;;  %v252_v50 = vld [vmem:[#allocation7 + $0x50] sm:$0xff] }
  0x4f   :  { %834 = vmatprep.subr.mxu0 %v273_v9  ;;  %873 = vmatpush3.msra.mxu1 %v257_v8  ;;  %v270_v46 = vld [vmem:[#allocation8 + $0x60] sm:$0xff]  ;;  %v269_v49 = vld [vmem:[#allocation8 + $0x58] sm:$0xff]  ;;  %v268_v51 = vld [vmem:[#allocation8 + $0x50] sm:$0xff] }
  0x50   :  { %835 = vmatpush3.msra.mxu0 %v273_v9  ;;  %874 = vmatprep.subr.mxu1 %v256_v10  ;;  %v251_v52 = vld [vmem:[#allocation7 + $0x48] sm:$0xff]  ;;  %v250_v54 = vld [vmem:[#allocation7 + $0x40] sm:$0xff]  ;;  %v249_v56 = vld [vmem:[#allocation7 + $0x38] sm:$0xff] }
  0x51   :  { %836 = vmatprep.subr.mxu0 %v272_v11  ;;  %875 = vmatpush3.msra.mxu1 %v256_v10  ;;  %v267_v53 = vld [vmem:[#allocation8 + $0x48] sm:$0xff]  ;;  %v266_v55 = vld [vmem:[#allocation8 + $0x40] sm:$0xff]  ;;  %v265_v57 = vld [vmem:[#allocation8 + $0x38] sm:$0xff] }
  0x52   :  { %121 = vadd.xlane.f32.xlu0 %v1313_v2  ;;  %123 = vadd.xlane.f32.xlu1 %v1322_v5  ;;  %v248_v58 = vld [vmem:[#allocation7 + $0x30] sm:$0xff]  ;;  %v247_v60 = vld [vmem:[#allocation7 + $0x28] sm:$0xff]  ;;  %v246_v62 = vld [vmem:[#allocation7 + $0x20] sm:$0xff] }
  0x53   :  { %837 = vmatpush3.msra.mxu0 %v272_v11  ;;  %876 = vmatprep.subr.mxu1 %v255_v12  ;;  %v264_v59 = vld [vmem:[#allocation8 + $0x30] sm:$0xff]  ;;  %v263_v61 = vld [vmem:[#allocation8 + $0x28] sm:$0xff]  ;;  %v262_v63 = vld [vmem:[#allocation8 + $0x20] sm:$0xff] }
  0x54   :  { %838 = vmatprep.subr.mxu0 %v271_v13  ;;  %877 = vmatpush3.msra.mxu1 %v255_v12  ;;  %v245_v8 = vld [vmem:[#allocation7 + $0x18] sm:$0xff]  ;;  %v244_v10 = vld [vmem:[#allocation7 + $0x10] sm:$0xff]  ;;  %v243_v12 = vld [vmem:[#allocation7 + $0x8] sm:$0xff] }
  0x55   :  { %839 = vmatpush3.msra.mxu0 %v271_v13  ;;  %878 = vmatprep.subr.mxu1 %v254_v14  ;;  %v261_v9 = vld [vmem:[#allocation8 + $0x18] sm:$0xff]  ;;  %v260_v11 = vld [vmem:[#allocation8 + $0x10] sm:$0xff]  ;;  %v259_v13 = vld [vmem:[#allocation8 + $0x8] sm:$0xff] }
  0x56   :  { %125 = vadd.xlane.f32.xlu0 %v1326_v6  ;;  %127 = vadd.xlane.f32.xlu1 %v1328_v7 }
  0x57   :  { %879 = vmatpush3.msra.mxu1 %v254_v14  ;;  %840 = vmatprep.subr.mxu0 %v270_v46  ;;  %v242_v14 = vld [vmem:[#allocation7] sm:$0xff] }
  0x58   :  { %880 = vmatprep.subr.mxu1 %v253_v47  ;;  %841 = vmatpush3.msra.mxu0 %v270_v46 }
  0x59   :  { %881 = vmatpush3.msra.mxu1 %v253_v47  ;;  %842 = vmatprep.subr.mxu0 %v269_v49 }
  0x5a   :  { %882 = vmatprep.subr.mxu1 %v252_v50  ;;  %843 = vmatpush3.msra.mxu0 %v269_v49 }
  0x5b   :  { %883 = vmatpush3.msra.mxu1 %v252_v50  ;;  %844 = vmatprep.subr.mxu0 %v268_v51 }
  0x5c   :  { %884 = vmatprep.subr.mxu1 %v251_v52  ;;  %845 = vmatpush3.msra.mxu0 %v268_v51 }
  0x5d   :  { %885 = vmatpush3.msra.mxu1 %v251_v52  ;;  %846 = vmatprep.subr.mxu0 %v267_v53 }
  0x5e   :  { %886 = vmatprep.subr.mxu1 %v250_v54  ;;  %847 = vmatpush3.msra.mxu0 %v267_v53 }
  0x5f   :  { %887 = vmatpush3.msra.mxu1 %v250_v54  ;;  %848 = vmatprep.subr.mxu0 %v266_v55 }
  0x60   :  { %888 = vmatprep.subr.mxu1 %v249_v56  ;;  %849 = vmatpush3.msra.mxu0 %v266_v55 }
  0x61   :  { %889 = vmatpush3.msra.mxu1 %v249_v56  ;;  %850 = vmatprep.subr.mxu0 %v265_v57 }
  0x62   :  { %890 = vmatprep.subr.mxu1 %v248_v58  ;;  %851 = vmatpush3.msra.mxu0 %v265_v57 }
  0x63   :  { %891 = vmatpush3.msra.mxu1 %v248_v58  ;;  %852 = vmatprep.subr.mxu0 %v264_v59 }
  0x64   :  { %892 = vmatprep.subr.mxu1 %v247_v60  ;;  %853 = vmatpush3.msra.mxu0 %v264_v59  ;;  %v120_v59 = vld [vmem:[%s1428_s2] sm:$0xf]  ;;  %s1224_s2 = smov [#allocation13]  }
  0x65   :  { %893 = vmatpush3.msra.mxu1 %v247_v60  ;;  %854 = vmatprep.subr.mxu0 %v263_v61  ;;  %s715_s13 = sshll.u32 %s1224_s2, 4  ;;  %s716_s13 = int_to_ptr.vmem [resolvable:$true] %s715_s13 }
  0x66   :  { %894 = vmatprep.subr.mxu1 %v246_v62  ;;  %855 = vmatpush3.msra.mxu0 %v263_v61  ;;  %s1164_s14 = scalar_lea.vmem %s716_s13, 512  ;;  %p1169_p3 = scmp.lt.s32.totalorder %s716_s13, %s716_s13 }
  0x67   :  { %895 = vmatpush3.msra.mxu1 %v246_v62  ;;  %856 = vmatprep.subr.mxu0 %v262_v63  ;;  %p1165_p2 = scmp.ne.s32.totalorder %s716_s13, %s1164_s14  ;;  %p1170_p4 = scmp.lt.s32.totalorder %s1164_s14, %s1164_s14 }
  0x68   :  { %896 = vmatprep.subr.mxu1 %v245_v8  ;;  %857 = vmatpush3.msra.mxu0 %v262_v63 }
  0x69   :  { %897 = vmatpush3.msra.mxu1 %v245_v8  ;;  %858 = vmatprep.subr.mxu0 %v261_v9  ;;  %p1171_p5 = por %p1170_p4, %p1169_p3 }
  0x6a   :  { %898 = vmatprep.subr.mxu1 %v244_v10  ;;  %859 = vmatpush3.msra.mxu0 %v261_v9 }
  0x6b   :  { %899 = vmatpush3.msra.mxu1 %v244_v10  ;;  %860 = vmatprep.subr.mxu0 %v260_v11  ;;  %p1172_p6 = pnand %p1171_p5, %p1165_p2 }
  0x6c   :  { %900 = vmatprep.subr.mxu1 %v243_v12  ;;  %861 = vmatpush3.msra.mxu0 %v260_v11 }
  0x6d   :  { %901 = vmatpush3.msra.mxu1 %v243_v12  ;;  %862 = vmatprep.subr.mxu0 %v259_v13 }
  0x6e   :  { %902 = vmatprep.subr.mxu1 %v242_v14  ;;  %863 = vmatpush3.msra.mxu0 %v259_v13 }
  0x6f   :  { %903 = vmatpush3.msra.mxu1 %v242_v14 }
  0x70   :  { %905 = vmatmul.mubr.f32.vlgmr.msra.gmra.mxu1 %v1322_v5 }
  0x71   :  { %907 = vmatprep.mubr.f32.mxu1 %v1326_v6 }
  0x74   :  { %908 = vmatmul.mubr.f32.gmra.mxu1 %v1328_v7 }
  0x75   :  { %980 = vmatprep.mubr.f32.mxu1 %v1307_v0 }
  0xd3   :  { %v183_v15 = vpop.xlane.xlu0 %182  ;;  %v187_v16 = vpop.xlane.xlu1 %186 }
  0xd4   :  { %v190_v17 = vmul.f32 0.0078125, %v183_v15  ;;  %v192_v18 = vmul.f32 0.0078125, %v187_v16  ;;  %v258_v15 = vld [vmem:[#allocation8] sm:$0xff]  ;;  %v483_v16 = vld [vmem:[#allocation10 + $0x78] sm:$0xff] }
  0xd5   :  { %864 = vmatprep.subr.mxu0 %v258_v15  ;;  %948 = vmatprep.subr.mxu1 %v483_v16 }
  0xd6   :  { %v1333_v19 = vsub.f32 %v1307_v0, %v190_v17  ;;  %v1336_v20 = vsub.f32 %v1309_v1, %v192_v18  ;;  %865 = vmatpush3.msra.mxu0 %v258_v15  ;;  %v1372_v17 = vld [vmem:[#allocation11 + $0x78] sm:$0xff]  ;;  %v482_v18 = vld [vmem:[#allocation10 + $0x70] sm:$0xff]  ;;  %949 = vmatpush3.msra.mxu1 %v483_v16 }
  0xd7   :  { %v185_v21 = vpop.xlane.xlu0 %184  ;;  %v189_v22 = vpop.xlane.xlu1 %188  ;;  %910 = vmatprep.subr.mxu0 %v1372_v17  ;;  %950 = vmatprep.subr.mxu1 %v482_v18 }
  0xd8   :  { %v191_v23 = vmul.f32 0.0078125, %v185_v21  ;;  %v198_v24 = vmul.f32 %v1333_v19, %v1333_v19  ;;  %v193_v25 = vmul.f32 0.0078125, %v189_v22  ;;  %v200_v28 = vmul.f32 %v1336_v20, %v1336_v20  ;;  %v481_v21 = vld [vmem:[#allocation10 + $0x68] sm:$0xff]  ;;  %951 = vmatpush3.msra.mxu1 %v482_v18  ;;  %v480_v22 = vld [vmem:[#allocation10 + $0x60] sm:$0xff] }
  0xd9   :  { %952 = vmatprep.subr.mxu1 %v481_v21 }
  0xda   :  { %v1341_v26 = vsub.f32 %v1315_v3, %v191_v23  ;;  %202 = vadd.xlane.f32.xlu0 %v198_v24  ;;  %v1344_v27 = vsub.f32 %v1317_v4, %v193_v25  ;;  %953 = vmatpush3.msra.mxu1 %v481_v21  ;;  %v479_v23 = vld [vmem:[#allocation10 + $0x58] sm:$0xff]  ;;  %v478_v24 = vld [vmem:[#allocation10 + $0x50] sm:$0xff]  ;;  %v477_v25 = vld [vmem:[#allocation10 + $0x48] sm:$0xff] }
  0xdb   :  { %v122_v29 = vpop.xlane.xlu0 %121  ;;  %v124_v30 = vpop.xlane.xlu1 %123  ;;  %954 = vmatprep.subr.mxu1 %v480_v22 }
  0xdc   :  { %v130_v31 = vmul.f32 0.0078125, %v122_v29  ;;  %v199_v32 = vmul.f32 %v1341_v26, %v1341_v26  ;;  %v131_v33 = vmul.f32 0.0078125, %v124_v30  ;;  %v201_v36 = vmul.f32 %v1344_v27, %v1344_v27  ;;  %955 = vmatpush3.msra.mxu1 %v480_v22  ;;  %v475_v29 = vld [vmem:[#allocation10 + $0x38] sm:$0xff]  ;;  %v474_v30 = vld [vmem:[#allocation10 + $0x30] sm:$0xff] }
  0xdd   :  { %956 = vmatprep.subr.mxu1 %v479_v23 }
  0xde   :  { %v1351_v34 = vsub.f32 %v1313_v2, %v130_v31  ;;  %204 = vadd.xlane.f32.xlu1 %v199_v32  ;;  %206 = vadd.xlane.f32.xlu0 %v200_v28  ;;  %v1354_v35 = vsub.f32 %v1322_v5, %v131_v33  ;;  %v476_v28 = vld [vmem:[#allocation10 + $0x40] sm:$0xff]  ;;  %v473_v31 = vld [vmem:[#allocation10 + $0x28] sm:$0xff]  ;;  %v471_v33 = vld [vmem:[#allocation10 + $0x18] sm:$0xff] }
  0xdf   :  { %v126_v37 = vpop.xlane.xlu0 %125  ;;  %v128_v38 = vpop.xlane.xlu1 %127  ;;  %957 = vmatpush3.msra.mxu1 %v479_v23  ;;  %v472_v32 = vld [vmem:[#allocation10 + $0x20] sm:$0xff] }
  0xe0   :  { %v132_v39 = vmul.f32 0.0078125, %v126_v37  ;;  %v138_v40 = vmul.f32 %v1351_v34, %v1351_v34  ;;  %v133_v41 = vmul.f32 0.0078125, %v128_v38  ;;  %v139_v44 = vmul.f32 %v1354_v35, %v1354_v35  ;;  %958 = vmatprep.subr.mxu1 %v478_v24  ;;  %v469_v37 = vld [vmem:[#allocation10 + $0x8] sm:$0xff]  ;;  %v468_v38 = vld [vmem:[#allocation10] sm:$0xff] }
  0xe1   :  { %959 = vmatpush3.msra.mxu1 %v478_v24 }
  0xe2   :  { %v1361_v42 = vsub.f32 %v1326_v6, %v132_v39  ;;  %208 = vadd.xlane.f32.xlu1 %v201_v36  ;;  %142 = vadd.xlane.f32.xlu0 %v138_v40  ;;  %v1364_v43 = vsub.f32 %v1328_v7, %v133_v41  ;;  %v470_v36 = vld [vmem:[#allocation10 + $0x10] sm:$0xff] }
  0xe3   :  { %960 = vmatprep.subr.mxu1 %v477_v25 }
  0xe4   :  { %v140_v45 = vmul.f32 %v1361_v42, %v1361_v42  ;;  %v141_v48 = vmul.f32 %v1364_v43, %v1364_v43  ;;  %961 = vmatpush3.msra.mxu1 %v477_v25 }
  0xe5   :  { %962 = vmatprep.subr.mxu1 %v476_v28 }
  0xe6   :  { %144 = vadd.xlane.f32.xlu1 %v139_v44  ;;  %146 = vadd.xlane.f32.xlu0 %v140_v45 }
  0xe7   :  { %963 = vmatpush3.msra.mxu1 %v476_v28 }
  0xe8   :  { %964 = vmatprep.subr.mxu1 %v475_v29 }
  0xe9   :  { %965 = vmatpush3.msra.mxu1 %v475_v29 }
  0xea   :  { %148 = vadd.xlane.f32.xlu1 %v141_v48  ;;  %966 = vmatprep.subr.mxu1 %v474_v30  ;;  %v166_v48 = vlaneseq }
  0xeb   :  { %967 = vmatpush3.msra.mxu1 %v474_v30 }
  0xec   :  { %968 = vmatprep.subr.mxu1 %v473_v31  ;;  %v167_v55 = vshrl.u32 %v166_v48, 7  ;;  %v493_v48 = vld [vmem:[#allocation11 + $0x48] sm:$0xff] }
  0xed   :  { %969 = vmatpush3.msra.mxu1 %v473_v31 }
  0xee   :  { %970 = vmatprep.subr.mxu1 %v472_v32  ;;  %v228_v58 = vsub.s32 2, %v167_v55  ;;  %v236_v60 = vsub.s32 3, %v167_v55  ;;  %v168_v12 = vsub.s32 0, %v167_v55  ;;  %v176_v18 = vsub.s32 1, %v167_v55 }
  0xef   :  { %971 = vmatpush3.msra.mxu1 %v472_v32 }
  0xf0   :  { %972 = vmatprep.subr.mxu1 %v471_v33  ;;  %v229_v61 = vrot.slane %v120_v59, %v228_v58  ;;  %v237_v8 = vrot.slane %v120_v59, %v236_v60  ;;  %v1388_v25 = vrot.slane %v120_v59, %v168_v12 }
  0xf1   :  { %973 = vmatpush3.msra.mxu1 %v471_v33 }
  0xf2   :  { %974 = vmatprep.subr.mxu1 %v470_v36 }
  0xf3   :  { %975 = vmatpush3.msra.mxu1 %v470_v36  ;;  %v498_v36 = vld [vmem:[#allocation11 + $0x70] sm:$0xff] }
  0xf4   :  { %976 = vmatprep.subr.mxu1 %v469_v37 }
  0xf5   :  { %977 = vmatpush3.msra.mxu1 %v469_v37 }
  0xf6   :  { %978 = vmatprep.subr.mxu1 %v468_v38 }
  0xf7   :  { %979 = vmatpush3.msra.mxu1 %v468_v38  ;;  %v497_v38 = vld [vmem:[#allocation11 + $0x68] sm:$0xff] }
  0xf8   :  { %981 = vmatmul.mubr.f32.vlgmr.msra.gmra.mxu1 %v1315_v3 }
  0xf9   :  { %983 = vmatprep.mubr.f32.mxu1 %v1309_v1 }
  0xfc   :  { %984 = vmatmul.mubr.f32.gmra.mxu1 %v1317_v4 }
 0x163   :  { %v203_v39 = vpop.xlane.xlu0 %202 }
 0x164   :  { %v210_v40 = vmul.f32 0.0078125, %v203_v39 }
 0x166   :  { %v214_v41 = vadd.f32 1e-05, %v210_v40 }
 0x167   :  { %v205_v44 = vpop.xlane.xlu1 %204  ;;  %v207_v45 = vpop.xlane.xlu0 %206 }
 0x168   :  { %996 = vrsqrt.f32 %v214_v41  ;;  %v211_v46 = vmul.f32 0.0078125, %v205_v44  ;;  %v212_v47 = vmul.f32 0.0078125, %v207_v45  ;;  %v496_v45 = vld [vmem:[#allocation11 + $0x60] sm:$0xff] }
 0x16a   :  { %v215_v49 = vadd.f32 1e-05, %v211_v46  ;;  %v216_v50 = vadd.f32 1e-05, %v212_v47  ;;  %v494_v47 = vld [vmem:[#allocation11 + $0x50] sm:$0xff] }
 0x16b   :  { %v209_v51 = vpop.xlane.xlu1 %208  ;;  %v143_v52 = vpop.xlane.xlu0 %142 }
 0x16c   :  { %998 = vrsqrt.f32 %v215_v49  ;;  %v213_v53 = vmul.f32 0.0078125, %v209_v51  ;;  %v150_v54 = vmul.f32 0.0078125, %v143_v52  ;;  %v492_v49 = vld [vmem:[#allocation11 + $0x40] sm:$0xff]  ;;  %v490_v51 = vld [vmem:[#allocation11 + $0x30] sm:$0xff]  ;;  %v489_v52 = vld [vmem:[#allocation11 + $0x28] sm:$0xff] }
 0x16d   :  { %1000 = vrsqrt.f32 %v216_v50  ;;  %v491_v50 = vld [vmem:[#allocation11 + $0x38] sm:$0xff] }
 0x16e   :  { %v217_v56 = vadd.f32 1e-05, %v213_v53  ;;  %v154_v57 = vadd.f32 1e-05, %v150_v54  ;;  %v488_v54 = vld [vmem:[#allocation11 + $0x20] sm:$0xff] }
 0x16f   :  { %v145_v11 = vpop.xlane.xlu1 %144  ;;  %v147_v21 = vpop.xlane.xlu0 %146 }
 0x170   :  { %1002 = vrsqrt.f32 %v217_v56  ;;  %v151_v28 = vmul.f32 0.0078125, %v145_v11  ;;  %v152_v31 = vmul.f32 0.0078125, %v147_v21  ;;  %v487_v56 = vld [vmem:[#allocation11 + $0x18] sm:$0xff] }
 0x171   :  { %1004 = vrsqrt.f32 %v154_v57 }
 0x172   :  { %v155_v40 = vadd.f32 1e-05, %v151_v28  ;;  %v156_v44 = vadd.f32 1e-05, %v152_v31 }
 0x173   :  { %v149_v32 = vpop.xlane.xlu1 %148 }
 0x174   :  { %v153_v41 = vmul.f32 0.0078125, %v149_v32  ;;  %1006 = vrsqrt.f32 %v155_v40 }
 0x175   :  { %v997_v62 = vpop.eup %996  ;;  %1008 = vrsqrt.f32 %v156_v44 }
 0x176   :  { %v222_v63 = vmul.f32 %v997_v62, %v1333_v19 }
 0x178   :  { %v230_v9 = vmul.f32 %v229_v61, %v222_v63 }
 0x179   :  { %v999_v10 = vpop.eup %998 }
 0x17a   :  { %v1001_v13 = vpop.eup %1000  ;;  %v238_v14 = vadd.f32 %v237_v8, %v230_v9  ;;  %v223_v15 = vmul.f32 %v999_v10, %v1341_v26 }
 0x17b   :  { %v224_v16 = vmul.f32 %v1001_v13, %v1336_v20  ;;  %v1392_v20 = vrot.slane %v120_v59, %v176_v18  ;;  %v486_v59 = vld [vmem:[#allocation11 + $0x10] sm:$0xff] }
 0x17c   :  { %866 = vmatprep.mubr.f32.mxu0 %v238_v14  ;;  %v231_v22 = vmul.f32 %v229_v61, %v223_v15 }
 0x17d   :  { %v1003_v23 = vpop.eup %1002  ;;  %v232_v24 = vmul.f32 %v229_v61, %v224_v16 }
 0x17e   :  { %v1005_v19 = vpop.eup %1004  ;;  %v239_v29 = vadd.f32 %v237_v8, %v231_v22  ;;  %v225_v30 = vmul.f32 %v1003_v23, %v1344_v27 }
 0x17f   :  { %v240_v33 = vadd.f32 %v237_v8, %v232_v24  ;;  %v162_v26 = vmul.f32 %v1005_v19, %v1351_v34  ;;  %v495_v34 = vld [vmem:[#allocation11 + $0x58] sm:$0xff] }
 0x180   :  { %867 = vmatmul.mubr.f32.vlgmr.msra.gmra.mxu0 %v239_v29  ;;  %v233_v37 = vmul.f32 %v229_v61, %v225_v30  ;;  %v485_v61 = vld [vmem:[#allocation11 + $0x8] sm:$0xff] }
 0x181   :  { %911 = vmatpush3.msra.mxu0 %v1372_v17  ;;  %869 = vmatprep.mubr.f32.mxu0 %v240_v33  ;;  %v170_v39 = vmul.f32 %v1388_v25, %v162_v26  ;;  %v157_v17 = vadd.f32 1e-05, %v153_v41  ;;  %v1007_v53 = vpop.eup %1006 }
 0x182   :  { %912 = vmatprep.subr.mxu0 %v498_v36  ;;  %v241_v27 = vadd.f32 %v237_v8, %v233_v37  ;;  %v1009_v55 = vpop.eup %1008  ;;  %v163_v57 = vmul.f32 %v1007_v53, %v1354_v35  ;;  %v484_v8 = vld [vmem:[#allocation11] sm:$0xff] }
 0x183   :  { %913 = vmatpush3.msra.mxu0 %v498_v36  ;;  %v178_v46 = vadd.f32 %v1392_v20, %v170_v39  ;;  %1010 = vrsqrt.f32 %v157_v17  ;;  %v164_v60 = vmul.f32 %v1009_v55, %v1361_v42 }
 0x184   :  { %914 = vmatprep.subr.mxu0 %v497_v38  ;;  %870 = vmatmul.mubr.f32.gmra.mxu0 %v241_v27  ;;  %v171_v62 = vmul.f32 %v1388_v25, %v163_v57 }
 0x185   :  { %915 = vmatpush3.msra.mxu0 %v497_v38  ;;  %942 = vmatprep.mubr.f32.mxu0 %v178_v46  ;;  %v172_v9 = vmul.f32 %v1388_v25, %v164_v60 }
 0x186   :  { %916 = vmatprep.subr.mxu0 %v496_v45  ;;  %v179_v35 = vadd.f32 %v1392_v20, %v171_v62 }
 0x187   :  { %917 = vmatpush3.msra.mxu0 %v496_v45  ;;  %v180_v42 = vadd.f32 %v1392_v20, %v172_v9 }
 0x188   :  { %918 = vmatprep.subr.mxu0 %v495_v34 }
 0x189   :  { %919 = vmatpush3.msra.mxu0 %v495_v34 }
 0x18a   :  { %920 = vmatprep.subr.mxu0 %v494_v47 }
 0x18b   :  { %921 = vmatpush3.msra.mxu0 %v494_v47 }
 0x18c   :  { %922 = vmatprep.subr.mxu0 %v493_v48 }
 0x18d   :  { %923 = vmatpush3.msra.mxu0 %v493_v48 }
 0x18e   :  { %924 = vmatprep.subr.mxu0 %v492_v49 }
 0x18f   :  { %925 = vmatpush3.msra.mxu0 %v492_v49 }
 0x190   :  { %926 = vmatprep.subr.mxu0 %v491_v50  ;;  %v1011_v58 = vpop.eup %1010 }
 0x191   :  { %927 = vmatpush3.msra.mxu0 %v491_v50  ;;  %v165_v63 = vmul.f32 %v1011_v58, %v1364_v43  ;;  %v906_v43 = vpop.f32.mrf.mxu1 }
 0x192   :  { %928 = vmatprep.subr.mxu0 %v490_v51 }
 0x193   :  { %929 = vmatpush3.msra.mxu0 %v490_v51  ;;  %v173_v10 = vmul.f32 %v1388_v25, %v165_v63  ;;  %v425_v12 = vpop.f32.mrf.mxu1 }
 0x194   :  { %930 = vmatprep.subr.mxu0 %v489_v52 }
 0x195   :  { %931 = vmatpush3.msra.mxu0 %v489_v52  ;;  %v181_v11 = vadd.f32 %v1392_v20, %v173_v10  ;;  %v909_v14 = vpop.f32.mrf.mxu1 }
 0x196   :  { %932 = vmatprep.subr.mxu0 %v488_v54 }
 0x197   :  { %933 = vmatpush3.msra.mxu0 %v488_v54  ;;  %v435_v23 = vpop.f32.mrf.mxu1 }
 0x198   :  { %934 = vmatprep.subr.mxu0 %v487_v56 }
 0x199   :  { %935 = vmatpush3.msra.mxu0 %v487_v56 }
 0x19a   :  { %936 = vmatprep.subr.mxu0 %v486_v59 }
 0x19b   :  { %937 = vmatpush3.msra.mxu0 %v486_v59 }
 0x19c   :  { %938 = vmatprep.subr.mxu0 %v485_v61 }
 0x19d   :  { %939 = vmatpush3.msra.mxu0 %v485_v61 }
 0x19e   :  { %940 = vmatprep.subr.mxu0 %v484_v8 }
 0x19f   :  { %941 = vmatpush3.msra.mxu0 %v484_v8 }
 0x1a0   :  { %943 = vmatmul.mubr.f32.vlgmr.msra.gmra.mxu0 %v179_v35 }
 0x1a1   :  { %945 = vmatprep.mubr.f32.mxu0 %v180_v42 }
 0x1a4   :  { %946 = vmatmul.mubr.f32.gmra.mxu0 %v181_v11 }
 0x1b8   :  { %v982_v39 = vpop.f32.mrf.mxu1 }
 0x1ba   :  { %v651_v40 = vpop.f32.mrf.mxu1 }
 0x1bc   :  { %v985_v46 = vpop.f32.mrf.mxu1 }
 0x1be   :  { %v661_v54 = vpop.f32.mrf.mxu1 }
 0x240   :  { %v868_v13 = vpop.f32.mrf.mxu0 }
 0x241   :  { %v431_v15 = vadd.f32 %v906_v43, %v868_v13 }
 0x242   :  { %v340_v16 = vpop.f32.mrf.mxu0 }
 0x243   :  { %v747_v18 = vmul.f32 -1.442695, %v431_v15  ;;  %v426_v21 = vadd.f32 %v425_v12, %v340_v16 }
 0x244   :  { %v871_v22 = vpop.f32.mrf.mxu0 }
 0x245   :  { %1012 = vpow2.f32 %v747_v18  ;;  %v746_v24 = vmul.f32 -1.442695, %v426_v21  ;;  %v441_v25 = vadd.f32 %v909_v14, %v871_v22 }
 0x246   :  { %v350_v19 = vpop.f32.mrf.mxu0 }
 0x247   :  { %1014 = vpow2.f32 %v746_v24  ;;  %v749_v28 = vmul.f32 -1.442695, %v441_v25  ;;  %v436_v29 = vadd.f32 %v435_v23, %v350_v19 }
 0x249   :  { %1016 = vpow2.f32 %v749_v28  ;;  %v748_v30 = vmul.f32 -1.442695, %v436_v29 }
 0x24b   :  { %1018 = vpow2.f32 %v748_v30 }
 0x252   :  { %v1013_v31 = vpop.eup %1012 }
 0x253   :  { %v457_v32 = vadd.f32 1.0, %v1013_v31 }
 0x254   :  { %v1015_v33 = vpop.eup %1014 }
 0x255   :  { %1020 = vrcp.f32 %v457_v32  ;;  %v456_v36 = vadd.f32 1.0, %v1015_v33 }
 0x256   :  { %v1017_v26 = vpop.eup %1016 }
 0x257   :  { %1022 = vrcp.f32 %v456_v36  ;;  %v459_v20 = vadd.f32 1.0, %v1017_v26 }
 0x258   :  { %v1019_v37 = vpop.eup %1018 }
 0x259   :  { %1024 = vrcp.f32 %v459_v20  ;;  %v458_v38 = vadd.f32 1.0, %v1019_v37 }
 0x25b   :  { %1026 = vrcp.f32 %v458_v38 }
 0x260   :  { %v944_v41 = vpop.f32.mrf.mxu0 }
 0x261   :  { %v657_v27 = vadd.f32 %v982_v39, %v944_v41 }
 0x262   :  { %v1021_v44 = vpop.eup %1020  ;;  %v566_v45 = vpop.f32.mrf.mxu0 }
 0x263   :  { %v751_v34 = vmul.f32 -1.442695, %v657_v27  ;;  %v652_v17 = vadd.f32 %v651_v40, %v566_v45  ;;  %v695_v47 = vmul.f32 %v1021_v44, %v1322_v5 }
 0x264   :  { %v1023_v48 = vpop.eup %1022  ;;  %v947_v49 = vpop.f32.mrf.mxu0 }
 0x265   :  { %1028 = vpow2.f32 %v751_v34  ;;  %v750_v50 = vmul.f32 -1.442695, %v652_v17  ;;  %v667_v51 = vadd.f32 %v985_v46, %v947_v49  ;;  %v694_v52 = vmul.f32 %v1023_v48, %v1313_v2  ;;  %699 = vst [vmem:[#allocation13 + $0x8] sm:$0xff] %v695_v47 }
 0x266   :  { %v1025_v53 = vpop.eup %1024  ;;  %v576_v55 = vpop.f32.mrf.mxu0 }
 0x267   :  { %1030 = vpow2.f32 %v750_v50  ;;  %v753_v56 = vmul.f32 -1.442695, %v667_v51  ;;  %v662_v57 = vadd.f32 %v661_v54, %v576_v55  ;;  %v697_v58 = vmul.f32 %v1025_v53, %v1328_v7  ;;  %698 = vst [vmem:[#allocation13] sm:$0xff] %v694_v52 }
 0x268   :  { %v1027_v5 = vpop.eup %1026 }
 0x269   :  { %1032 = vpow2.f32 %v753_v56  ;;  %v752_v59 = vmul.f32 -1.442695, %v662_v57  ;;  %v696_v60 = vmul.f32 %v1027_v5, %v1326_v6  ;;  %701 = vst [vmem:[#allocation13 + $0x18] sm:$0xff] %v697_v58 }
 0x26b   :  { %1034 = vpow2.f32 %v752_v59  ;;  %700 = vst [vmem:[#allocation13 + $0x10] sm:$0xff] %v696_v60 }
 0x26c   :  { %1175 = shalt.err (!%p1172_p6)
}
 0x26d   :  { %721 = dma.vmem_to_hbm [thread:$0]  %s716_s13, 512, %s1433_s7, [#allocation4], %s1218_s10, %s1218_s10, %s1219_s11  }
 0x26e   :  { %s1225_s7 = smov [#allocation14]  }
 0x26f   :  { %s727_s17 = sshll.u32 %s1225_s7, 4  ;;  %s728_s17 = int_to_ptr.vmem [resolvable:$true] %s727_s17 }
 0x270   :  { %s1184_s18 = scalar_lea.vmem %s728_s17, 512  ;;  %p1189_p8 = scmp.lt.s32.totalorder %s728_s17, %s728_s17 }
 0x271   :  { %p1185_p7 = scmp.ne.s32.totalorder %s728_s17, %s1184_s18  ;;  %p1190_p9 = scmp.lt.s32.totalorder %s1184_s18, %s1184_s18 }
 0x272   :  { %v1029_v2 = vpop.eup %1028 }
 0x273   :  { %v683_v6 = vadd.f32 1.0, %v1029_v2  ;;  %p1191_p10 = por %p1190_p9, %p1189_p8 }
 0x274   :  { %v1031_v7 = vpop.eup %1030 }
 0x275   :  { %1036 = vrcp.f32 %v683_v6  ;;  %v682_v61 = vadd.f32 1.0, %v1031_v7  ;;  %p1192_p11 = pnand %p1191_p10, %p1185_p7 }
 0x276   :  { %v1033_v62 = vpop.eup %1032 }
 0x277   :  { %1038 = vrcp.f32 %v682_v61  ;;  %v685_v63 = vadd.f32 1.0, %v1033_v62 }
 0x278   :  { %v1035_v8 = vpop.eup %1034 }
 0x279   :  { %1040 = vrcp.f32 %v685_v63  ;;  %v684_v9 = vadd.f32 1.0, %v1035_v8 }
 0x27b   :  { %1042 = vrcp.f32 %v684_v9 }
 0x282   :  { %v1037_v35 = vpop.eup %1036 }
 0x283   :  { %v703_v10 = vmul.f32 %v1037_v35, %v1315_v3 }
 0x284   :  { %v1039_v42 = vpop.eup %1038 }
 0x285   :  { %v702_v11 = vmul.f32 %v1039_v42, %v1307_v0  ;;  %707 = vst [vmem:[#allocation14 + $0x8] sm:$0xff] %v703_v10 }
 0x286   :  { %v1041_v43 = vpop.eup %1040 }
 0x287   :  { %v705_v12 = vmul.f32 %v1041_v43, %v1317_v4  ;;  %706 = vst [vmem:[#allocation14] sm:$0xff] %v702_v11 }
 0x288   :  { %v1043_v13 = vpop.eup %1042 }
 0x289   :  { %v704_v14 = vmul.f32 %v1043_v13, %v1309_v1  ;;  %709 = vst [vmem:[#allocation14 + $0x18] sm:$0xff] %v705_v12 }
 0x28b   :  { %708 = vst [vmem:[#allocation14 + $0x10] sm:$0xff] %v704_v14 }
 0x28c   :  { %1195 = shalt.err (!%p1192_p11)
}
 0x28d   :  { %733 = dma.vmem_to_hbm [thread:$0]  %s728_s17, 512, %s1434_s8, [#allocation15], %s1218_s10, %s1218_s10, %s1219_s11  }
 0x28e   :  { %1212 = dma.done.wait [#allocation4], 512  }
 0x28f   :  { %1213 = vsyncadd [#allocation4], 4294966784 }
 0x290   :  { %1214 = dma.done.wait [#allocation15], 512  }
 0x291   :  { %1215 = vsyncadd [#allocation15], 4294966784 }
 0x292   :  { %740 = vsyncpa [#allocation3], 1 }
 0x293   :  { %741 = vsyncpa [#allocation6], 1 }
 0x294   :  { %742 = vsyncpa [#allocation9], 1 }
 0x295   :  { %743 = vsyncpa [#allocation12], 1 }
 0x296   :  { %744 = vsyncpa [#allocation4], 1 }
 0x297   :  { %745 = vsyncpa [#allocation15], 1 }

</bundles_post_ra>
